<compile_context>
chip_gen: v5e
topology: v5e:2x2
jax: 0.10.0
libtpu: 0.0.40
codegen_flags: <defaults>
</compile_context>

<pallas_src>
import jax
import jax.numpy as jnp
from jax.experimental import pallas as pl
from jax.experimental.pallas import tpu as pltpu


# ----------------------------- configuration -----------------------------
LATENT_DIM = 32
CHANNELS = 4
IMG_SIZE = 16
IMG_SHAPE = (CHANNELS, IMG_SIZE, 1)          # matches img_shape in reference
OUT_DIM = CHANNELS * IMG_SIZE * 1            # int(np.prod(img_shape)) = 64
OUT_PAD = 128                                # lane-dense padded output width
H1 = 256
H2 = 512
PARAM_W = H1 + H2 + OUT_PAD                  # 896, multiple of 128
BN_EPS = 1e-5
LRELU_SLOPE = 0.2


# ------------------------------ Pallas kernel -----------------------------
def _generator_kernel(
    z_ref,        # (B, LATENT_DIM) f32, VMEM
    w1_ref,       # (LATENT_DIM, H1) bf16, VMEM
    gbs_ref,      # (2, PARAM_W) f32, VMEM  -- gamma/beta BN1 | BN2 | b3(pad)
    w2_hbm_ref,   # (H1, H2) bf16, ANY (HBM) -- manual DMA
    w3_hbm_ref,   # (H2, OUT_PAD) bf16, ANY (HBM) -- manual DMA
    out_ref,      # (B, OUT_PAD) f32, VMEM
    w2_buf,       # (H1, H2) bf16 VMEM scratch
    w3_buf,       # (H2, OUT_PAD) bf16 VMEM scratch
    sem,          # DMA semaphores, shape (2,)
):
    # Kick off the big weight copies immediately; they overlap block-1 work.
    cp_w2 = pltpu.make_async_copy(w2_hbm_ref, w2_buf, sem.at[0])
    cp_w3 = pltpu.make_async_copy(w3_hbm_ref, w3_buf, sem.at[1])
    cp_w2.start()
    cp_w3.start()

    # ---- block 1: Linear(no bias; cancelled by BN) -> BN -> LeakyReLU ----
    h = jnp.dot(z_ref[...].astype(jnp.bfloat16), w1_ref[...],
                preferred_element_type=jnp.float32)           # (B, H1) f32
    mu = jnp.mean(h, axis=0, keepdims=True)
    hc = h - mu
    var = jnp.mean(hc * hc, axis=0, keepdims=True)            # biased var
    scale = gbs_ref[0:1, 0:H1] * jax.lax.rsqrt(var + BN_EPS)  # gamma folded in
    h = hc * scale + gbs_ref[1:2, 0:H1]
    h = jnp.where(h > 0, h, LRELU_SLOPE * h)

    # ---- block 2: Linear(no bias; cancelled by BN) -> BN -> LeakyReLU ----
    cp_w2.wait()
    h = jnp.dot(h.astype(jnp.bfloat16), w2_buf[...],
                preferred_element_type=jnp.float32)           # (B, H2) f32
    mu = jnp.mean(h, axis=0, keepdims=True)
    hc = h - mu
    var = jnp.mean(hc * hc, axis=0, keepdims=True)
    scale = gbs_ref[0:1, H1:H1 + H2] * jax.lax.rsqrt(var + BN_EPS)
    h = hc * scale + gbs_ref[1:2, H1:H1 + H2]
    h = jnp.where(h > 0, h, LRELU_SLOPE * h)

    # ---- final Linear(512 -> 128 padded; real width 64) ----
    cp_w3.wait()
    out = jnp.dot(h.astype(jnp.bfloat16), w3_buf[...],
                  preferred_element_type=jnp.float32)
    out = out + gbs_ref[0:1, H1 + H2:H1 + H2 + OUT_PAD]       # padded b3
    out_ref[...] = out.astype(out_ref.dtype)                  # lane-dense store


# ------------------------------ wrapper ------------------------------------
def _vmem_spec():
    # whole array resident in VMEM, no grid tiling (tiny problem sizes).
    return pl.BlockSpec(memory_space=pltpu.MemorySpace.VMEM)


def _hbm_spec():
    # raw ref, left in place; kernel DMAs it manually for compute/DMA overlap.
    return pl.BlockSpec(memory_space=pl.ANY)


def generator_forward(z, kp):
    """z: (B, LATENT_DIM) float32 -> img: (B, C, IMG_SIZE, 1) float32."""
    B = z.shape[0]
    flops = 2 * B * (LATENT_DIM * H1 + H1 * H2 + H2 * OUT_PAD)
    bytes_accessed = (
        2 * (LATENT_DIM * H1 + H1 * H2 + H2 * OUT_PAD)   # bf16 weights
        + 4 * 2 * PARAM_W                                # f32 gamma/beta/b3 slab
        + 4 * B * LATENT_DIM                             # z in
        + 4 * B * OUT_PAD                                # out
    )
    flat = pl.pallas_call(
        _generator_kernel,
        out_shape=jax.ShapeDtypeStruct((B, OUT_PAD), jnp.float32),
        in_specs=[
            _vmem_spec(),   # z
            _vmem_spec(),   # w1
            _vmem_spec(),   # gbs slab
            _hbm_spec(),    # w2  (manual DMA, overlapped with block 1)
            _hbm_spec(),    # w3p (manual DMA, overlapped with blocks 1-2)
        ],
        out_specs=_vmem_spec(),
        scratch_shapes=[
            pltpu.VMEM((H1, H2), jnp.bfloat16),
            pltpu.VMEM((H2, OUT_PAD), jnp.bfloat16),
            pltpu.SemaphoreType.DMA((2,)),
        ],
        cost_estimate=pl.CostEstimate(
            flops=flops, transcendentals=H1 + H2,
            bytes_accessed=bytes_accessed),
    )(z, kp["w1"], kp["gbs"], kp["w2"], kp["w3p"])
    # img.view(img.shape[0], *img_shape) -- drop lane padding, glue reshape.
    # (If a downstream kernel can consume the padded (B,128) slab directly,
    # do that instead and skip this slice+reshape round-trip.)
    return flat[:, :OUT_DIM].reshape(B, *IMG_SHAPE)


# ------------------------ deterministic parameter init ---------------------
def init_params(key):
    """Master f32 params in PyTorch semantics (weights pre-transposed)."""
    ks = jax.random.split(key, 6)

    def linear(kw, kb, fan_in, fan_out):
        bound = 1.0 / jnp.sqrt(jnp.float32(fan_in))
        w = jax.random.uniform(kw, (fan_in, fan_out), jnp.float32, -bound, bound)
        b = jax.random.uniform(kb, (1, fan_out), jnp.float32, -bound, bound)
        return w, b

    w1, b1 = linear(ks[0], ks[1], LATENT_DIM, H1)
    w2, b2 = linear(ks[2], ks[3], H1, H2)
    w3, b3 = linear(ks[4], ks[5], H2, OUT_DIM)

    return {
        "w1": w1, "b1": b1,
        "g1": jnp.ones((1, H1), jnp.float32), "be1": jnp.zeros((1, H1), jnp.float32),
        "w2": w2, "b2": b2,
        "g2": jnp.ones((1, H2), jnp.float32), "be2": jnp.zeros((1, H2), jnp.float32),
        "w3": w3, "b3": b3,
    }


def pack_kernel_params(p):
    """bf16 weights, one merged f32 param slab, lane-padded final layer.

    b1/b2 are deliberately dropped: training-mode BN cancels them exactly.
    gbs layout: row0 = [gamma1 | gamma2 | b3(pad to 128)]
                row1 = [beta1  | beta2  | zeros]
    """
    bf16 = jnp.bfloat16
    w3p = jnp.zeros((H2, OUT_PAD), bf16).at[:, :OUT_DIM].set(p["w3"].astype(bf16))

    gbs = jnp.zeros((2, PARAM_W), jnp.float32)
    gbs = gbs.at[:, 0:H1].set(jnp.concatenate([p["g1"], p["be1"]], axis=0))
    gbs = gbs.at[:, H1:H1 + H2].set(jnp.concatenate([p["g2"], p["be2"]], axis=0))
    gbs = gbs.at[0:1, H1 + H2:H1 + H2 + OUT_DIM].set(p["b3"])

    return {
        "w1": p["w1"].astype(bf16),     # (32, 256)  bf16
        "w2": p["w2"].astype(bf16),     # (256, 512) bf16 -- manual DMA
        "w3p": w3p,                     # (512, 128) bf16 -- manual DMA
        "gbs": gbs,                     # (2, 896)   f32
    }


# ----------------------------- references (JAX) -----------------------------
def reference_mixed(z, p):
    """Same math as the kernel (bf16 matmuls, f32 BN, biases cancelled)."""
    bf16 = jnp.bfloat16

    def bn_lrelu(h, g, be):
        mu = jnp.mean(h, axis=0, keepdims=True)
        hc = h - mu
        var = jnp.mean(hc * hc, axis=0, keepdims=True)
        h = hc * (g * jax.lax.rsqrt(var + BN_EPS)) + be
        return jnp.where(h > 0, h, LRELU_SLOPE * h)

    h = bn_lrelu(jnp.dot(z.astype(bf16), p["w1"].astype(bf16),
                         preferred_element_type=jnp.float32), p["g1"], p["be1"])
    h = bn_lrelu(jnp.dot(h.astype(bf16), p["w2"].astype(bf16),
                         preferred_element_type=jnp.float32), p["g2"], p["be2"])
    out = jnp.dot(h.astype(bf16), p["w3"].astype(bf16),
                  preferred_element_type=jnp.float32) + p["b3"]
    return out.reshape(z.shape[0], *IMG_SHAPE)


def reference_f32(z, p):
    """Full f32, exact PyTorch semantics (with the Linear biases)."""
    def bn_lrelu(h, g, be):
        mu = jnp.mean(h, axis=0, keepdims=True)
        var = jnp.mean((h - mu) ** 2, axis=0, keepdims=True)
        h = (h - mu) / jnp.sqrt(var + BN_EPS) * g + be
        return jnp.where(h > 0, h, LRELU_SLOPE * h)

    h = bn_lrelu(z @ p["w1"] + p["b1"], p["g1"], p["be1"])
    h = bn_lrelu(h @ p["w2"] + p["b2"], p["g2"], p["be2"])
    out = h @ p["w3"] + p["b3"]
    return out.reshape(z.shape[0], *IMG_SHAPE)


# --------------------------------- main -------------------------------------
if __name__ == "__main__":
    key = jax.random.PRNGKey(0)
    k_param, k_z = jax.random.split(key)

    params = init_params(k_param)
    kparams = pack_kernel_params(params)

    B = 8
    # noise(quantity): standard normal latent vectors
    z = jax.random.normal(k_z, (B, LATENT_DIM), jnp.float32)

    img = generator_forward(z, kparams)
    img = jax.block_until_ready(img)

    assert img.shape == (B, CHANNELS, IMG_SIZE, 1), img.shape

    # Tight check: kernel == equivalent mixed-precision JAX math.
    ref_m = reference_mixed(z, params)
    err_m = float(jnp.max(jnp.abs(img - ref_m)))
    assert jnp.allclose(img, ref_m, atol=1e-2, rtol=1e-2), err_m

    # Loose check: kernel matches full-f32 PyTorch semantics within bf16 noise
    # (also validates that the Linear biases b1/b2 cancel under training BN).
    ref_f = reference_f32(z, params)
    err_f = float(jnp.max(jnp.abs(img - ref_f)))
    assert jnp.allclose(img, ref_f, atol=0.15, rtol=0.15), err_f

    print("KERNEL_OK")
</pallas_src>

<mosaic_0001>
module attributes {stable_mosaic.version = 11 : i64} {
  func.func @_generator_kernel(%arg0: memref<8x32xf32, #tpu.memory_space<vmem>>, %arg1: memref<32x256xbf16, #tpu.memory_space<vmem>>, %arg2: memref<2x896xf32, #tpu.memory_space<vmem>>, %arg3: memref<256x512xbf16, #tpu.memory_space<any>>, %arg4: memref<512x128xbf16, #tpu.memory_space<any>>, %arg5: memref<8x128xf32, #tpu.memory_space<vmem>>, %arg6: memref<256x512xbf16, #tpu.memory_space<vmem>>, %arg7: memref<512x128xbf16, #tpu.memory_space<vmem>>, %arg8: memref<2x!tpu.dma_semaphore, #tpu.memory_space<semaphore_mem>>) attributes {dimension_semantics = [], scalar_prefetch = 0 : i64, scratch_operands = 3 : i64, tpu.core_type = #tpu.core_type<tc>} {
    %c0_i32 = arith.constant 0 : i32
    %0 = tpu.memref_slice %arg8[%c0_i32] : memref<2x!tpu.dma_semaphore, #tpu.memory_space<semaphore_mem>> -> memref<1x!tpu.dma_semaphore, #tpu.memory_space<semaphore_mem>>
    %1 = tpu.memref_squeeze %0 : memref<1x!tpu.dma_semaphore, #tpu.memory_space<semaphore_mem>> -> memref<!tpu.dma_semaphore, #tpu.memory_space<semaphore_mem>>
    tpu.enqueue_dma source(%arg3 : memref<256x512xbf16, #tpu.memory_space<any>>) target(%arg6 : memref<256x512xbf16, #tpu.memory_space<vmem>>) target_semaphore(%1 : memref<!tpu.dma_semaphore, #tpu.memory_space<semaphore_mem>>)
    %c1_i32 = arith.constant 1 : i32
    %2 = tpu.memref_slice %arg8[%c1_i32] : memref<2x!tpu.dma_semaphore, #tpu.memory_space<semaphore_mem>> -> memref<1x!tpu.dma_semaphore, #tpu.memory_space<semaphore_mem>>
    %3 = tpu.memref_squeeze %2 : memref<1x!tpu.dma_semaphore, #tpu.memory_space<semaphore_mem>> -> memref<!tpu.dma_semaphore, #tpu.memory_space<semaphore_mem>>
    tpu.enqueue_dma source(%arg4 : memref<512x128xbf16, #tpu.memory_space<any>>) target(%arg7 : memref<512x128xbf16, #tpu.memory_space<vmem>>) target_semaphore(%3 : memref<!tpu.dma_semaphore, #tpu.memory_space<semaphore_mem>>)
    %c0 = arith.constant 0 : index
    %c0_0 = arith.constant 0 : index
    %4 = vector.load %arg0[%c0, %c0_0] : memref<8x32xf32, #tpu.memory_space<vmem>>, vector<8x32xf32>
    %5 = arith.truncf %4 : vector<8x32xf32> to vector<8x32xbf16>
    %c0_1 = arith.constant 0 : index
    %c0_2 = arith.constant 0 : index
    %6 = vector.load %arg1[%c0_1, %c0_2] : memref<32x256xbf16, #tpu.memory_space<vmem>>, vector<32x256xbf16>
    %cst = arith.constant dense<0.000000e+00> : vector<8x256xf32>
    %7 = tpu.matmul %5, %6, %cst {dimension_numbers = #tpu.dot_dimension_numbers<[1], [0], [0], [1], [0, 0, 1, 1], [], []>} : vector<8x32xbf16>, vector<32x256xbf16>, vector<8x256xf32> -> vector<8x256xf32>
    %cst_3 = arith.constant dense<0.000000e+00> : vector<256xf32>
    %8 = vector.multi_reduction <add>, %7, %cst_3 [0] : vector<8x256xf32> to vector<256xf32>
    %9 = vector.shape_cast %8 : vector<256xf32> to vector<1x256xf32>
    %cst_4 = arith.constant 8.000000e+00 : f32
    %10 = vector.broadcast %cst_4 : f32 to vector<1x256xf32>
    %11 = arith.divf %9, %10 : vector<1x256xf32>
    %12 = vector.broadcast %11 : vector<1x256xf32> to vector<8x256xf32>
    %13 = arith.subf %7, %12 : vector<8x256xf32>
    %14 = arith.mulf %13, %13 : vector<8x256xf32>
    %cst_5 = arith.constant dense<0.000000e+00> : vector<256xf32>
    %15 = vector.multi_reduction <add>, %14, %cst_5 [0] : vector<8x256xf32> to vector<256xf32>
    %16 = vector.shape_cast %15 : vector<256xf32> to vector<1x256xf32>
    %cst_6 = arith.constant 8.000000e+00 : f32
    %17 = vector.broadcast %cst_6 : f32 to vector<1x256xf32>
    %18 = arith.divf %16, %17 : vector<1x256xf32>
    %c0_7 = arith.constant 0 : index
    %c0_8 = arith.constant 0 : index
    %19 = vector.load %arg2[%c0_7, %c0_8] : memref<2x896xf32, #tpu.memory_space<vmem>>, vector<1x256xf32>
    %cst_9 = arith.constant 9.99999974E-6 : f32
    %20 = vector.broadcast %cst_9 : f32 to vector<1x256xf32>
    %21 = arith.addf %18, %20 : vector<1x256xf32>
    %22 = math.rsqrt %21 : vector<1x256xf32>
    %23 = arith.mulf %19, %22 : vector<1x256xf32>
    %24 = vector.broadcast %23 : vector<1x256xf32> to vector<8x256xf32>
    %25 = arith.mulf %13, %24 : vector<8x256xf32>
    %c1 = arith.constant 1 : index
    %c0_10 = arith.constant 0 : index
    %26 = vector.load %arg2[%c1, %c0_10] : memref<2x896xf32, #tpu.memory_space<vmem>>, vector<1x256xf32>
    %27 = vector.broadcast %26 : vector<1x256xf32> to vector<8x256xf32>
    %28 = arith.addf %25, %27 : vector<8x256xf32>
    %cst_11 = arith.constant 0.000000e+00 : f32
    %29 = vector.broadcast %cst_11 : f32 to vector<8x256xf32>
    %30 = arith.cmpf ogt, %28, %29 : vector<8x256xf32>
    %cst_12 = arith.constant 2.000000e-01 : f32
    %31 = vector.broadcast %cst_12 : f32 to vector<8x256xf32>
    %32 = arith.mulf %31, %28 : vector<8x256xf32>
    %33 = arith.select %30, %28, %32 : vector<8x256xi1>, vector<8x256xf32>
    %c0_i32_13 = arith.constant 0 : i32
    %34 = tpu.memref_slice %arg8[%c0_i32_13] : memref<2x!tpu.dma_semaphore, #tpu.memory_space<semaphore_mem>> -> memref<1x!tpu.dma_semaphore, #tpu.memory_space<semaphore_mem>>
    %35 = tpu.memref_squeeze %34 : memref<1x!tpu.dma_semaphore, #tpu.memory_space<semaphore_mem>> -> memref<!tpu.dma_semaphore, #tpu.memory_space<semaphore_mem>>
    tpu.wait_dma2 semaphore(%35 : memref<!tpu.dma_semaphore, #tpu.memory_space<semaphore_mem>>) src(%arg3 : memref<256x512xbf16, #tpu.memory_space<any>>) dst(%arg6 : memref<256x512xbf16, #tpu.memory_space<vmem>>)
    %36 = arith.truncf %33 : vector<8x256xf32> to vector<8x256xbf16>
    %c0_14 = arith.constant 0 : index
    %c0_15 = arith.constant 0 : index
    %37 = vector.load %arg6[%c0_14, %c0_15] : memref<256x512xbf16, #tpu.memory_space<vmem>>, vector<256x512xbf16>
    %cst_16 = arith.constant dense<0.000000e+00> : vector<8x512xf32>
    %38 = tpu.matmul %36, %37, %cst_16 {dimension_numbers = #tpu.dot_dimension_numbers<[1], [0], [0], [1], [0, 0, 1, 1], [], []>} : vector<8x256xbf16>, vector<256x512xbf16>, vector<8x512xf32> -> vector<8x512xf32>
    %cst_17 = arith.constant dense<0.000000e+00> : vector<512xf32>
    %39 = vector.multi_reduction <add>, %38, %cst_17 [0] : vector<8x512xf32> to vector<512xf32>
    %40 = vector.shape_cast %39 : vector<512xf32> to vector<1x512xf32>
    %cst_18 = arith.constant 8.000000e+00 : f32
    %41 = vector.broadcast %cst_18 : f32 to vector<1x512xf32>
    %42 = arith.divf %40, %41 : vector<1x512xf32>
    %43 = vector.broadcast %42 : vector<1x512xf32> to vector<8x512xf32>
    %44 = arith.subf %38, %43 : vector<8x512xf32>
    %45 = arith.mulf %44, %44 : vector<8x512xf32>
    %cst_19 = arith.constant dense<0.000000e+00> : vector<512xf32>
    %46 = vector.multi_reduction <add>, %45, %cst_19 [0] : vector<8x512xf32> to vector<512xf32>
    %47 = vector.shape_cast %46 : vector<512xf32> to vector<1x512xf32>
    %cst_20 = arith.constant 8.000000e+00 : f32
    %48 = vector.broadcast %cst_20 : f32 to vector<1x512xf32>
    %49 = arith.divf %47, %48 : vector<1x512xf32>
    %c0_21 = arith.constant 0 : index
    %c256 = arith.constant 256 : index
    %50 = vector.load %arg2[%c0_21, %c256] : memref<2x896xf32, #tpu.memory_space<vmem>>, vector<1x512xf32>
    %cst_22 = arith.constant 9.99999974E-6 : f32
    %51 = vector.broadcast %cst_22 : f32 to vector<1x512xf32>
    %52 = arith.addf %49, %51 : vector<1x512xf32>
    %53 = math.rsqrt %52 : vector<1x512xf32>
    %54 = arith.mulf %50, %53 : vector<1x512xf32>
    %55 = vector.broadcast %54 : vector<1x512xf32> to vector<8x512xf32>
    %56 = arith.mulf %44, %55 : vector<8x512xf32>
    %c1_23 = arith.constant 1 : index
    %c256_24 = arith.constant 256 : index
    %57 = vector.load %arg2[%c1_23, %c256_24] : memref<2x896xf32, #tpu.memory_space<vmem>>, vector<1x512xf32>
    %58 = vector.broadcast %57 : vector<1x512xf32> to vector<8x512xf32>
    %59 = arith.addf %56, %58 : vector<8x512xf32>
    %cst_25 = arith.constant 0.000000e+00 : f32
    %60 = vector.broadcast %cst_25 : f32 to vector<8x512xf32>
    %61 = arith.cmpf ogt, %59, %60 : vector<8x512xf32>
    %cst_26 = arith.constant 2.000000e-01 : f32
    %62 = vector.broadcast %cst_26 : f32 to vector<8x512xf32>
    %63 = arith.mulf %62, %59 : vector<8x512xf32>
    %64 = arith.select %61, %59, %63 : vector<8x512xi1>, vector<8x512xf32>
    %c1_i32_27 = arith.constant 1 : i32
    %65 = tpu.memref_slice %arg8[%c1_i32_27] : memref<2x!tpu.dma_semaphore, #tpu.memory_space<semaphore_mem>> -> memref<1x!tpu.dma_semaphore, #tpu.memory_space<semaphore_mem>>
    %66 = tpu.memref_squeeze %65 : memref<1x!tpu.dma_semaphore, #tpu.memory_space<semaphore_mem>> -> memref<!tpu.dma_semaphore, #tpu.memory_space<semaphore_mem>>
    tpu.wait_dma2 semaphore(%66 : memref<!tpu.dma_semaphore, #tpu.memory_space<semaphore_mem>>) src(%arg4 : memref<512x128xbf16, #tpu.memory_space<any>>) dst(%arg7 : memref<512x128xbf16, #tpu.memory_space<vmem>>)
    %67 = arith.truncf %64 : vector<8x512xf32> to vector<8x512xbf16>
    %c0_28 = arith.constant 0 : index
    %c0_29 = arith.constant 0 : index
    %68 = vector.load %arg7[%c0_28, %c0_29] : memref<512x128xbf16, #tpu.memory_space<vmem>>, vector<512x128xbf16>
    %cst_30 = arith.constant dense<0.000000e+00> : vector<8x128xf32>
    %69 = tpu.matmul %67, %68, %cst_30 {dimension_numbers = #tpu.dot_dimension_numbers<[1], [0], [0], [1], [0, 0, 1, 1], [], []>} : vector<8x512xbf16>, vector<512x128xbf16>, vector<8x128xf32> -> vector<8x128xf32>
    %c0_31 = arith.constant 0 : index
    %c768 = arith.constant 768 : index
    %70 = vector.load %arg2[%c0_31, %c768] : memref<2x896xf32, #tpu.memory_space<vmem>>, vector<1x128xf32>
    %71 = vector.broadcast %70 : vector<1x128xf32> to vector<8x128xf32>
    %72 = arith.addf %69, %71 : vector<8x128xf32>
    %c0_32 = arith.constant 0 : index
    %c0_33 = arith.constant 0 : index
    %73 = vector.load %arg5[%c0_32, %c0_33] : memref<8x128xf32, #tpu.memory_space<vmem>>, vector<8x128xf32>
    tpu.vector_store %arg5[%c0_32, %c0_33], %72 {strides = array<i32>} : memref<8x128xf32, #tpu.memory_space<vmem>>, vector<8x128xf32>,
    return
  }
}

</mosaic_0001>

<bundles_post_ra>
// kernel: tpu_custom_call.1
= control target key start
LH: loop header
LB: loop body
LE: loop exit
PB: predicated region body
PF: predicated region fallthrough
CT: control target
= control target key end

     0   :  { %10 = vsyncpa [#allocation6], 0  ;;  %s2060_s0 = inlined_call_operand.hbm [shape: f32[8,32], index: 0, kind: input, shape index: {}]   ;;  %s2061_s1 = inlined_call_operand.hbm [shape: bf16[32,256], index: 1, kind: input, shape index: {}]   ;;  %s2062_s2 = inlined_call_operand.hbm [shape: f32[2,896], index: 2, kind: input, shape index: {}]   ;;  %s2063_s3 = inlined_call_operand.hbm [shape: bf16[256,512], index: 3, kind: input, shape index: {}]   ;;  %s2064_s4 = inlined_call_operand.hbm [shape: bf16[512,128], index: 4, kind: input, shape index: {}]   ;;  %s2065_s5 = inlined_call_operand.hbm [shape: f32[8,128], index: 5, kind: output, shape index: {}]  }
   0x1   :  { %11 = vsyncpa [#allocation9], 0  ;;  %s28_s20 = sshll.u32 %s2061_s1, 4  ;;  %s29_s20 = int_to_ptr.hbm [resolvable:$true] %s28_s20 }
   0x2   :  { %12 = vsyncpa [#allocation7], 0  ;;  %s1925_s21 = smov [#allocation8]   ;;  %s18_s25 = sshll.u32 %s2060_s0, 4  ;;  %s19_s25 = int_to_ptr.hbm [resolvable:$true] %s18_s25 }
   0x3   :  { %s30_s22 = sshll.u32 %s1925_s21, 4  ;;  %s1926_s26 = smov 128   ;;  %s31_s22 = int_to_ptr.vmem [resolvable:$true] %s30_s22 }
   0x4   :  { %s1927_s27 = smov 8   ;;  %s1928_s28 = smov [#allocation5]  }
   0x5   :  { %36 = dma.hbm_to_vmem [thread:$0]  %s29_s20, 512, %s31_s22, [#allocation9], %s1926_s26, %s1926_s26, %s1927_s27  }
   0x6   :  { %s20_s29 = sshll.u32 %s1928_s28, 4  ;;  %s42_s7 = sshll.u32 %s2062_s2, 4  ;;  %s21_s29 = int_to_ptr.vmem [resolvable:$true] %s20_s29  ;;  %s43_s7 = int_to_ptr.hbm [resolvable:$true] %s42_s7 }
   0x7   :  { %23 = dma.hbm_to_vmem [thread:$0]  %s19_s25, 128, %s21_s29, [#allocation6]  }
   0x8   :  { %s1929_s1 = smov [#allocation10]  }
   0x9   :  { %s44_s8 = sshll.u32 %s1929_s1, 4  ;;  %s45_s8 = int_to_ptr.vmem [resolvable:$true] %s44_s8 }
   0xa   :  { %47 = dma.hbm_to_vmem [thread:$0]  %s43_s7, 224, %s45_s8, [#allocation9]  }
   0xb   :  { %1915 = dma.done.wait [#allocation6], 128  }
   0xc   :  { %1916 = vsyncadd [#allocation6], 4294967168 }
   0xd   :  { %1917 = dma.done.wait [#allocation9], 736  }
   0xe   :  { %1918 = vsyncadd [#allocation9], 4294966560  ;;  %v1253_v0 = vld [vmem:[#allocation8 + $0x10] sm:$0xf]  ;;  %v1650_v1 = vld [vmem:[#allocation8 + $0x14] sm:$0xf0] }
   0xf   :  { %v1649_v2 = vld [vmem:[#allocation8 + $0x14] sm:$0xf]  ;;  %v1254_v3 = vor.u32 %v1650_v1, %v1253_v0  ;;  %v1255_v4 = vld [vmem:[#allocation8 + $0x18] sm:$0xf0]  ;;  %v1245_v5 = vld [vmem:[#allocation8] sm:$0xf] }
  0x10   :  { %v1648_v6 = vld [vmem:[#allocation8 + $0x4] sm:$0xf0]  ;;  %v1258_v7 = vor.u32 %v1649_v2, %v1255_v4  ;;  %v1647_v8 = vld [vmem:[#allocation8 + $0x4] sm:$0xf]  ;;  %v1247_v9 = vld [vmem:[#allocation8 + $0x8] sm:$0xf0] }
  0x11   :  { %124 = vmatpush.bf16.msra.mxu0 %v1254_v3  ;;  %v1246_v10 = vor.u32 %v1648_v6, %v1245_v5  ;;  %v88_v11 = vld [vmem:[#allocation5] sm:$0xff]  ;;  %v1250_v12 = vor.u32 %v1647_v8, %v1247_v9  ;;  %vm114_vm0 = vcmask 261120   ;;  %s68_s9 = sshll.u32 %s2063_s3, 4  ;;  %s1930_s10 = smov [#allocation2]   ;;  %v1932_v14 = vmov 8.0   ;;  %s69_s9 = int_to_ptr.hbm [resolvable:$true] %s68_s9 }
  0x12   :  { %137 = vmatpush.bf16.msra.mxu1 %v1258_v7  ;;  %v89_v13 = vpack.c.bf16 %v88_v11, %v88_v11  ;;  %s70_s11 = sshll.u32 %s1930_s10, 4  ;;  %s82_s14 = sshll.u32 %s2064_s4, 4  ;;  %1756 = vrcp.f32 %v1932_v14  ;;  %vm209_vm7 = vcmask 1040384   ;;  %v183_v8 = vld [vmem:[#allocation10] ss:$2 sm:$0x3]  ;;  %s71_s11 = int_to_ptr.vmem [resolvable:$true] %s70_s11  ;;  %s83_s14 = int_to_ptr.hbm [resolvable:$true] %s82_s14 }
  0x13   :  { %73 = dma.hbm_to_vmem [thread:$0]  %s69_s9, 8192, %s71_s11, [#allocation4] }
  0x14   :  { %s1931_s15 = smov [#allocation3]  }
  0x15   :  { %125 = vmatpush.bf16.msra.mxu0 %v1246_v10  ;;  %s84_s16 = sshll.u32 %s1931_s15, 4  ;;  %s85_s16 = int_to_ptr.vmem [resolvable:$true] %s84_s16 }
  0x16   :  { %138 = vmatpush.bf16.msra.mxu1 %v1250_v12  ;;  %87 = dma.hbm_to_vmem [thread:$0]  %s83_s14, 4096, %s85_s16, [#allocation4 + $0x1]  ;;  %v221_v12 = vld [vmem:[#allocation10 + $0x1] ss:$2 sm:$0x3] }
  0x18   :  { %1259 = vmatmul.msk.bf16.vlgmr.msra.gmra.mxu0 %vm114_vm0, %v89_v13  ;;  %v1757_v15 = vpop.eup %1756 }
  0x19   :  { %1260 = vmatmul.msk.bf16.vlgmr.msra.gmra.mxu1 %vm114_vm0, %v89_v13  ;;  %v157_v16 = vmul.f32 8.0, %v1757_v15  ;;  %vm161_vm1 = vweird.f32 %v1757_v15 }
  0x1b   :  { %v158_v17 = vsub.f32 1.0, %v157_v16  ;;  %v223_v16 = vperm.slane %v221_v12, 0 }
  0x1d   :  { %v159_v21 = vmul.f32 %v1757_v15, %v158_v17  ;;  %v224_v17 = vperm.slane %v221_v12, 1 }
  0x1f   :  { %v160_v26 = vadd.f32 %v1757_v15, %v159_v21 }
  0x21   :  { %v1979_v33 = vsel %vm161_vm1, %v1757_v15, %v160_v26 }
  0x95   :  { %v127_v18 = vpop.f32.mrf.mxu0 }
  0x96   :  { %v144_v19 = vrot.slane %v127_v18, 4  ;;  %v140_v20 = vpop.f32.mrf.mxu1 }
  0x97   :  { %v150_v22 = vrot.slane %v140_v20, 4 }
  0x98   :  { %v145_v23 = vadd.f32 %v144_v19, %v127_v18 }
  0x99   :  { %v151_v24 = vadd.f32 %v150_v22, %v140_v20 }
  0x9a   :  { %v146_v25 = vrot.slane %v145_v23, 2 }
  0x9b   :  { %v152_v27 = vrot.slane %v151_v24, 2 }
  0x9c   :  { %v147_v28 = vadd.f32 %v146_v25, %v145_v23 }
  0x9d   :  { %v153_v29 = vadd.f32 %v152_v27, %v151_v24  ;;  %v129_v30 = vpop.f32.mrf.mxu0 }
  0x9e   :  { %v148_v31 = vrot.slane %v147_v28, 1  ;;  %v142_v32 = vpop.f32.mrf.mxu1 }
  0x9f   :  { %v154_v34 = vrot.slane %v153_v29, 1 }
  0xa0   :  { %v149_v35 = vadd.f32 %v148_v31, %v147_v28 }
  0xa1   :  { %v155_v36 = vadd.f32 %v154_v34, %v153_v29 }
  0xa2   :  { %v163_v37 = vmul.f32 %v1979_v33, %v149_v35 }
  0xa3   :  { %v164_v38 = vmul.f32 %v1979_v33, %v155_v36 }
  0xa4   :  { %v165_v39 = vsub.f32 %v127_v18, %v163_v37 }
  0xa5   :  { %v166_v40 = vsub.f32 %v140_v20, %v164_v38 }
  0xa6   :  { %v167_v41 = vmul.f32 %v165_v39, %v165_v39 }
  0xa7   :  { %v168_v42 = vmul.f32 %v166_v40, %v166_v40 }
  0xa8   :  { %v169_v43 = vrot.slane %v167_v41, 4 }
  0xa9   :  { %v175_v44 = vrot.slane %v168_v42, 4 }
  0xaa   :  { %v170_v45 = vadd.f32 %v169_v43, %v167_v41 }
  0xab   :  { %v176_v46 = vadd.f32 %v175_v44, %v168_v42 }
  0xac   :  { %v171_v47 = vrot.slane %v170_v45, 2 }
  0xad   :  { %v177_v48 = vrot.slane %v176_v46, 2 }
  0xae   :  { %v172_v49 = vadd.f32 %v171_v47, %v170_v45 }
  0xaf   :  { %v178_v50 = vadd.f32 %v177_v48, %v176_v46 }
  0xb0   :  { %v173_v51 = vrot.slane %v172_v49, 1 }
  0xb1   :  { %v179_v52 = vrot.slane %v178_v50, 1 }
  0xb2   :  { %v174_v53 = vadd.f32 %v173_v51, %v172_v49 }
  0xb3   :  { %v180_v54 = vadd.f32 %v179_v52, %v178_v50 }
  0xb4   :  { %v181_v55 = vmul.f32 %v174_v53, %v1979_v33 }
  0xb5   :  { %v182_v56 = vmul.f32 %v180_v54, %v1979_v33 }
  0xb6   :  { %v184_v57 = vadd.f32 1e-05, %v181_v55 }
  0xb7   :  { %v185_v58 = vadd.f32 1e-05, %v182_v56 }
  0xb8   :  { %1758 = vrsqrt.f32 %v184_v57  ;;  %vm192_vm6 = vweird.f32 %v184_v57 }
  0xb9   :  { %1760 = vrsqrt.f32 %v185_v58  ;;  %vm202_vm4 = vweird.f32 %v185_v58 }
  0xbe   :  { %v1759_v59 = vpop.eup %1758 }
  0xbf   :  { %v1761_v60 = vpop.eup %1760  ;;  %v187_v61 = vmul.f32 %v1759_v59, %v184_v57  ;;  %vm193_vm3 = vweird.f32 %v1759_v59 }
  0xc0   :  { %v197_v62 = vmul.f32 %v1761_v60, %v185_v58  ;;  %vm203_vm2 = vweird.f32 %v1761_v60  ;;  %vm194_vm8 = vmor %vm192_vm6, %vm193_vm3 }
  0xc1   :  { %v188_v63 = vmul.f32 %v1759_v59, %v187_v61  ;;  %vm204_vm5 = vmor %vm202_vm4, %vm203_vm2 }
  0xc2   :  { %v198_v0 = vmul.f32 %v1761_v60, %v197_v62 }
  0xc3   :  { %v189_v1 = vmul.f32 0.5, %v188_v63 }
  0xc4   :  { %v199_v2 = vmul.f32 0.5, %v198_v0 }
  0xc5   :  { %v190_v3 = vsub.f32 1.5, %v189_v1 }
  0xc6   :  { %v200_v4 = vsub.f32 1.5, %v199_v2 }
  0xc7   :  { %v191_v5 = vmul.f32 %v1759_v59, %v190_v3 }
  0xc8   :  { %v201_v6 = vmul.f32 %v1761_v60, %v200_v4 }
  0xc9   :  { %v195_v10 = vsel %vm194_vm8, %v1759_v59, %v191_v5 }
  0xca   :  { %v205_v7 = vsel %vm204_vm5, %v1761_v60, %v201_v6 }
  0xcb   :  { %v208_v9 = vrot.slane %v205_v7, 7 }
  0xcd   :  { %v210_v11 = vsel %vm209_vm7, %v195_v10, %v208_v9 }
  0xce   :  { %v212_v13 = vmul.f32 %v210_v11, %v183_v8 }
  0xd0   :  { %v214_v14 = vperm.slane %v212_v13, 0  ;;  %v215_v15 = vperm.slane %v212_v13, 1 }
  0xd2   :  { %v218_v18 = vmul.f32 %v214_v14, %v165_v39  ;;  %v219_v19 = vmul.f32 %v215_v15, %v166_v40 }
  0xd4   :  { %v227_v20 = vadd.f32 %v223_v16, %v218_v18  ;;  %v228_v21 = vadd.f32 %v224_v17, %v219_v19 }
  0xd6   :  { %vm229_vm9 = vcmp.gt.f32.partialorder %v227_v20, 0.0  ;;  %vm230_vm10 = vcmp.gt.f32.partialorder %v228_v21, 0.0  ;;  %v231_v22 = vmul.f32 0.2, %v227_v20  ;;  %v232_v23 = vmul.f32 0.2, %v228_v21 }
  0xd8   :  { %v1986_v24 = vsel %vm229_vm9, %v227_v20, %v231_v22  ;;  %v1988_v25 = vsel %vm230_vm10, %v228_v21, %v232_v23 }
  0xd9   :  { %1919 = dma.done.wait [#allocation4], 8192 }
  0xda   :  { %1920 = vsyncadd [#allocation4], 4294959104  ;;  %v1375_v26 = vld [vmem:[#allocation2 + $0xe0] sm:$0xf]  ;;  %v1681_v27 = vld [vmem:[#allocation2 + $0xec] sm:$0xf0] }
  0xdb   :  { %v1503_v28 = vld [vmem:[#allocation2 + $0x1e0] sm:$0xf]  ;;  %v1376_v29 = vor.u32 %v1681_v27, %v1375_v26  ;;  %v1713_v30 = vld [vmem:[#allocation2 + $0x1ec] sm:$0xf0]  ;;  %v1679_v31 = vld [vmem:[#allocation2 + $0xe4] sm:$0xf] }
  0xdc   :  { %v1377_v32 = vld [vmem:[#allocation2 + $0xf0] sm:$0xf0]  ;;  %v1504_v34 = vor.u32 %v1713_v30, %v1503_v28  ;;  %v1711_v36 = vld [vmem:[#allocation2 + $0x1e4] sm:$0xf]  ;;  %v1359_v38 = vld [vmem:[#allocation2 + $0xc0] sm:$0xf] }
  0xdd   :  { %v1380_v35 = vor.u32 %v1679_v31, %v1377_v32  ;;  %v1505_v37 = vld [vmem:[#allocation2 + $0x1f0] sm:$0xf0]  ;;  %625 = vmatpush.bf16.msra.mxu2 %v1376_v29  ;;  %v1677_v40 = vld [vmem:[#allocation2 + $0xcc] sm:$0xf0]  ;;  %v1487_v41 = vld [vmem:[#allocation2 + $0x1c0] sm:$0xf] }
  0xde   :  { %v1508_v39 = vor.u32 %v1711_v36, %v1505_v37  ;;  %v1709_v42 = vld [vmem:[#allocation2 + $0x1cc] sm:$0xf0]  ;;  %638 = vmatpush.bf16.msra.mxu3 %v1504_v34  ;;  %v1360_v43 = vor.u32 %v1677_v40, %v1359_v38  ;;  %v1675_v45 = vld [vmem:[#allocation2 + $0xc4] sm:$0xf]  ;;  %v1361_v46 = vld [vmem:[#allocation2 + $0xd0] sm:$0xf0] }
  0xdf   :  { %651 = vmatpush.bf16.msrb.mxu0 %v1380_v35  ;;  %v1488_v44 = vor.u32 %v1709_v42, %v1487_v41  ;;  %v1707_v47 = vld [vmem:[#allocation2 + $0x1c4] sm:$0xf]  ;;  %v1364_v48 = vor.u32 %v1675_v45, %v1361_v46  ;;  %v1489_v49 = vld [vmem:[#allocation2 + $0x1d0] sm:$0xf0]  ;;  %v1343_v50 = vld [vmem:[#allocation2 + $0xa0] sm:$0xf] }
  0xe0   :  { %664 = vmatpush.bf16.msrb.mxu1 %v1508_v39  ;;  %v1673_v51 = vld [vmem:[#allocation2 + $0xac] sm:$0xf0]  ;;  %v1492_v52 = vor.u32 %v1707_v47, %v1489_v49  ;;  %v1471_v53 = vld [vmem:[#allocation2 + $0x1a0] sm:$0xf]  ;;  %v1671_v55 = vld [vmem:[#allocation2 + $0xa4] sm:$0xf] }
  0xe1   :  { %v1705_v54 = vld [vmem:[#allocation2 + $0x1ac] sm:$0xf0]  ;;  %626 = vmatpush.bf16.msra.mxu2 %v1360_v43  ;;  %v1344_v56 = vor.u32 %v1673_v51, %v1343_v50  ;;  %v1345_v57 = vld [vmem:[#allocation2 + $0xb0] sm:$0xf0]  ;;  %v1703_v58 = vld [vmem:[#allocation2 + $0x1a4] sm:$0xf] }
  0xe2   :  { %v1473_v59 = vld [vmem:[#allocation2 + $0x1b0] sm:$0xf0]  ;;  %639 = vmatpush.bf16.msra.mxu3 %v1488_v44  ;;  %v1472_v60 = vor.u32 %v1705_v54, %v1471_v53  ;;  %v1348_v61 = vor.u32 %v1671_v55, %v1345_v57  ;;  %v1327_v62 = vld [vmem:[#allocation2 + $0x80] sm:$0xf]  ;;  %v1669_v63 = vld [vmem:[#allocation2 + $0x8c] sm:$0xf0] }
  0xe3   :  { %652 = vmatpush.bf16.msrb.mxu0 %v1364_v48  ;;  %v1455_v0 = vld [vmem:[#allocation2 + $0x180] sm:$0xf]  ;;  %v1476_v1 = vor.u32 %v1703_v58, %v1473_v59  ;;  %v1701_v2 = vld [vmem:[#allocation2 + $0x18c] sm:$0xf0]  ;;  %v1667_v3 = vld [vmem:[#allocation2 + $0x84] sm:$0xf]  ;;  %v1328_v7 = vor.u32 %v1669_v63, %v1327_v62 }
  0xe4   :  { %665 = vmatpush.bf16.msrb.mxu1 %v1492_v52  ;;  %v1329_v4 = vld [vmem:[#allocation2 + $0x90] sm:$0xf0]  ;;  %v1699_v5 = vld [vmem:[#allocation2 + $0x184] sm:$0xf]  ;;  %v1456_v8 = vor.u32 %v1701_v2, %v1455_v0  ;;  %v1311_v10 = vld [vmem:[#allocation2 + $0x60] sm:$0xf] }
  0xe5   :  { %v1457_v6 = vld [vmem:[#allocation2 + $0x190] sm:$0xf0]  ;;  %627 = vmatpush.bf16.msra.mxu2 %v1344_v56  ;;  %v1332_v9 = vor.u32 %v1667_v3, %v1329_v4  ;;  %v1665_v11 = vld [vmem:[#allocation2 + $0x6c] sm:$0xf0]  ;;  %v1439_v12 = vld [vmem:[#allocation2 + $0x160] sm:$0xf] }
  0xe6   :  { %640 = vmatpush.bf16.msra.mxu3 %v1472_v60  ;;  %v1460_v13 = vor.u32 %v1699_v5, %v1457_v6  ;;  %v1697_v14 = vld [vmem:[#allocation2 + $0x16c] sm:$0xf0]  ;;  %v1663_v15 = vld [vmem:[#allocation2 + $0x64] sm:$0xf]  ;;  %v1313_v16 = vld [vmem:[#allocation2 + $0x70] sm:$0xf0]  ;;  %v1312_v19 = vor.u32 %v1665_v11, %v1311_v10 }
  0xe7   :  { %653 = vmatpush.bf16.msrb.mxu0 %v1348_v61  ;;  %v1695_v17 = vld [vmem:[#allocation2 + $0x164] sm:$0xf]  ;;  %v1441_v18 = vld [vmem:[#allocation2 + $0x170] sm:$0xf0]  ;;  %v1440_v20 = vor.u32 %v1697_v14, %v1439_v12  ;;  %v1316_v21 = vor.u32 %v1663_v15, %v1313_v16  ;;  %v1295_v22 = vld [vmem:[#allocation2 + $0x40] sm:$0xf] }
  0xe8   :  { %666 = vmatpush.bf16.msrb.mxu1 %v1476_v1  ;;  %v1661_v23 = vld [vmem:[#allocation2 + $0x4c] sm:$0xf0]  ;;  %v1423_v26 = vld [vmem:[#allocation2 + $0x140] sm:$0xf]  ;;  %v1444_v27 = vor.u32 %v1695_v17, %v1441_v18  ;;  %v1659_v29 = vld [vmem:[#allocation2 + $0x44] sm:$0xf]  ;;  %v1996_v17 = vpack.c.bf16 %v1988_v25, %v1988_v25 }
  0xe9   :  { %628 = vmatpush.bf16.msra.mxu2 %v1328_v7  ;;  %v1693_v28 = vld [vmem:[#allocation2 + $0x14c] sm:$0xf0]  ;;  %v1297_v30 = vld [vmem:[#allocation2 + $0x50] sm:$0xf0]  ;;  %v1691_v31 = vld [vmem:[#allocation2 + $0x144] sm:$0xf]  ;;  %v1296_v34 = vor.u32 %v1661_v23, %v1295_v22 }
  0xea   :  { %641 = vmatpush.bf16.msra.mxu3 %v1456_v8  ;;  %v1425_v32 = vld [vmem:[#allocation2 + $0x150] sm:$0xf0]  ;;  %v1424_v35 = vor.u32 %v1693_v28, %v1423_v26  ;;  %v1300_v36 = vor.u32 %v1659_v29, %v1297_v30  ;;  %v1279_v37 = vld [vmem:[#allocation2 + $0x20] sm:$0xf]  ;;  %v1657_v38 = vld [vmem:[#allocation2 + $0x2c] sm:$0xf0] }
  0xeb   :  { %654 = vmatpush.bf16.msrb.mxu0 %v1332_v9  ;;  %v1407_v39 = vld [vmem:[#allocation2 + $0x120] sm:$0xf]  ;;  %v1428_v40 = vor.u32 %v1691_v31, %v1425_v32  ;;  %v1689_v41 = vld [vmem:[#allocation2 + $0x12c] sm:$0xf0]  ;;  %v1655_v42 = vld [vmem:[#allocation2 + $0x24] sm:$0xf]  ;;  %v1280_v46 = vor.u32 %v1657_v38, %v1279_v37 }
  0xec   :  { %667 = vmatpush.bf16.msrb.mxu1 %v1460_v13  ;;  %v1281_v43 = vld [vmem:[#allocation2 + $0x30] sm:$0xf0]  ;;  %v1687_v44 = vld [vmem:[#allocation2 + $0x124] sm:$0xf]  ;;  %v1263_v47 = vld [vmem:[#allocation2] sm:$0xf]  ;;  %v1408_v49 = vor.u32 %v1689_v41, %v1407_v39  ;;  %v1992_v13 = vpack.c.bf16 %v1986_v24, %v1986_v24 }
  0xed   :  { %629 = vmatpush.bf16.msra.mxu2 %v1312_v19  ;;  %v1409_v45 = vld [vmem:[#allocation2 + $0x130] sm:$0xf0]  ;;  %v1653_v48 = vld [vmem:[#allocation2 + $0xc] sm:$0xf0]  ;;  %v1284_v50 = vor.u32 %v1655_v42, %v1281_v43  ;;  %v1391_v51 = vld [vmem:[#allocation2 + $0x100] sm:$0xf] }
  0xee   :  { %642 = vmatpush.bf16.msra.mxu3 %v1440_v20  ;;  %v1685_v52 = vld [vmem:[#allocation2 + $0x10c] sm:$0xf0]  ;;  %v1651_v53 = vld [vmem:[#allocation2 + $0x4] sm:$0xf]  ;;  %v1412_v54 = vor.u32 %v1687_v44, %v1409_v45  ;;  %v1265_v55 = vld [vmem:[#allocation2 + $0x10] sm:$0xf0]  ;;  %v1264_v61 = vor.u32 %v1653_v48, %v1263_v47 }
  0xef   :  { %655 = vmatpush.bf16.msrb.mxu0 %v1316_v21  ;;  %v1683_v56 = vld [vmem:[#allocation2 + $0x104] sm:$0xf]  ;;  %v1393_v57 = vld [vmem:[#allocation2 + $0x110] sm:$0xf0]  ;;  %v1383_v58 = vld [vmem:[#allocation2 + $0xe8] sm:$0xf]  ;;  %v1392_v1 = vor.u32 %v1685_v52, %v1391_v51  ;;  %v1268_v2 = vor.u32 %v1651_v53, %v1265_v55 }
  0xf0   :  { %668 = vmatpush.bf16.msrb.mxu1 %v1444_v27  ;;  %v1682_v59 = vld [vmem:[#allocation2 + $0xf4] sm:$0xf0]  ;;  %v1511_v60 = vld [vmem:[#allocation2 + $0x1e8] sm:$0xf]  ;;  %v1680_v63 = vld [vmem:[#allocation2 + $0xec] sm:$0xf]  ;;  %v1396_v5 = vor.u32 %v1683_v56, %v1393_v57 }
  0xf1   :  { %630 = vmatpush.bf16.msra.mxu2 %v1296_v34  ;;  %v1714_v62 = vld [vmem:[#allocation2 + $0x1f4] sm:$0xf0]  ;;  %v1385_v0 = vld [vmem:[#allocation2 + $0xf8] sm:$0xf0]  ;;  %v1712_v3 = vld [vmem:[#allocation2 + $0x1ec] sm:$0xf]  ;;  %v1384_v6 = vor.u32 %v1682_v59, %v1383_v58 }
  0xf2   :  { %643 = vmatpush.bf16.msra.mxu3 %v1424_v35  ;;  %v1513_v4 = vld [vmem:[#allocation2 + $0x1f8] sm:$0xf0]  ;;  %v1512_v7 = vor.u32 %v1714_v62, %v1511_v60  ;;  %v1388_v8 = vor.u32 %v1680_v63, %v1385_v0  ;;  %v1367_v9 = vld [vmem:[#allocation2 + $0xc8] sm:$0xf]  ;;  %v1678_v10 = vld [vmem:[#allocation2 + $0xd4] sm:$0xf0] }
  0xf3   :  { %656 = vmatpush.bf16.msrb.mxu0 %v1300_v36  ;;  %v1495_v11 = vld [vmem:[#allocation2 + $0x1c8] sm:$0xf]  ;;  %v1516_v12 = vor.u32 %v1712_v3, %v1513_v4  ;;  %v1710_v14 = vld [vmem:[#allocation2 + $0x1d4] sm:$0xf0]  ;;  %v1676_v15 = vld [vmem:[#allocation2 + $0xcc] sm:$0xf]  ;;  %v1368_v20 = vor.u32 %v1678_v10, %v1367_v9 }
  0xf4   :  { %669 = vmatpush.bf16.msrb.mxu1 %v1428_v40  ;;  %v1369_v16 = vld [vmem:[#allocation2 + $0xd8] sm:$0xf0]  ;;  %v1708_v18 = vld [vmem:[#allocation2 + $0x1cc] sm:$0xf]  ;;  %v1496_v21 = vor.u32 %v1710_v14, %v1495_v11  ;;  %v1351_v24 = vld [vmem:[#allocation2 + $0xa8] sm:$0xf] }
  0xf5   :  { %631 = vmatpush.bf16.msra.mxu2 %v1280_v46  ;;  %v1497_v19 = vld [vmem:[#allocation2 + $0x1d8] sm:$0xf0]  ;;  %v1372_v22 = vor.u32 %v1676_v15, %v1369_v16  ;;  %v1674_v23 = vld [vmem:[#allocation2 + $0xb4] sm:$0xf0]  ;;  %v1479_v26 = vld [vmem:[#allocation2 + $0x1a8] sm:$0xf] }
  0xf6   :  { %644 = vmatpush.bf16.msra.mxu3 %v1408_v49  ;;  %v1500_v27 = vor.u32 %v1708_v18, %v1497_v19  ;;  %v1706_v28 = vld [vmem:[#allocation2 + $0x1b4] sm:$0xf0]  ;;  %v1672_v29 = vld [vmem:[#allocation2 + $0xac] sm:$0xf]  ;;  %v1353_v25 = vld [vmem:[#allocation2 + $0xb8] sm:$0xf0]  ;;  %v1352_v32 = vor.u32 %v1674_v23, %v1351_v24 }
  0xf7   :  { %657 = vmatpush.bf16.msrb.mxu0 %v1284_v50  ;;  %v1704_v30 = vld [vmem:[#allocation2 + $0x1ac] sm:$0xf]  ;;  %v1481_v31 = vld [vmem:[#allocation2 + $0x1b8] sm:$0xf0]  ;;  %v1480_v34 = vor.u32 %v1706_v28, %v1479_v26  ;;  %v1356_v35 = vor.u32 %v1672_v29, %v1353_v25  ;;  %v1335_v36 = vld [vmem:[#allocation2 + $0x88] sm:$0xf] }
  0xf8   :  { %670 = vmatpush.bf16.msrb.mxu1 %v1412_v54  ;;  %v1670_v37 = vld [vmem:[#allocation2 + $0x94] sm:$0xf0]  ;;  %v1463_v38 = vld [vmem:[#allocation2 + $0x188] sm:$0xf]  ;;  %v1484_v39 = vor.u32 %v1704_v30, %v1481_v31  ;;  %v1668_v41 = vld [vmem:[#allocation2 + $0x8c] sm:$0xf] }
  0xf9   :  { %632 = vmatpush.bf16.msra.mxu2 %v1264_v61  ;;  %v1702_v40 = vld [vmem:[#allocation2 + $0x194] sm:$0xf0]  ;;  %v1337_v42 = vld [vmem:[#allocation2 + $0x98] sm:$0xf0]  ;;  %v1700_v43 = vld [vmem:[#allocation2 + $0x18c] sm:$0xf]  ;;  %v1336_v45 = vor.u32 %v1670_v37, %v1335_v36 }
  0xfa   :  { %645 = vmatpush.bf16.msra.mxu3 %v1392_v1  ;;  %v1465_v44 = vld [vmem:[#allocation2 + $0x198] sm:$0xf0]  ;;  %v1464_v46 = vor.u32 %v1702_v40, %v1463_v38  ;;  %v1340_v47 = vor.u32 %v1668_v41, %v1337_v42  ;;  %v1319_v48 = vld [vmem:[#allocation2 + $0x68] sm:$0xf]  ;;  %v1666_v49 = vld [vmem:[#allocation2 + $0x74] sm:$0xf0] }
  0xfb   :  { %658 = vmatpush.bf16.msrb.mxu0 %v1268_v2  ;;  %v1447_v50 = vld [vmem:[#allocation2 + $0x168] sm:$0xf]  ;;  %v1468_v51 = vor.u32 %v1700_v43, %v1465_v44  ;;  %v1698_v52 = vld [vmem:[#allocation2 + $0x174] sm:$0xf0]  ;;  %v1664_v53 = vld [vmem:[#allocation2 + $0x6c] sm:$0xf]  ;;  %v1320_v57 = vor.u32 %v1666_v49, %v1319_v48 }
  0xfc   :  { %671 = vmatpush.bf16.msrb.mxu1 %v1396_v5  ;;  %633 = vmatmul.bf16.vlgmr.msra.gmra.mxu2 %v1992_v13  ;;  %v1321_v54 = vld [vmem:[#allocation2 + $0x78] sm:$0xf0]  ;;  %v1696_v55 = vld [vmem:[#allocation2 + $0x16c] sm:$0xf]  ;;  %v1448_v58 = vor.u32 %v1698_v52, %v1447_v50  ;;  %v1303_v60 = vld [vmem:[#allocation2 + $0x48] sm:$0xf] }
  0xfd   :  { %677 = vmatpush.bf16.msrb.mxu2 %v1384_v6  ;;  %646 = vmatmul.bf16.vlgmr.msra.gmra.mxu3 %v1996_v17  ;;  %v1449_v56 = vld [vmem:[#allocation2 + $0x178] sm:$0xf0]  ;;  %v1324_v59 = vor.u32 %v1664_v53, %v1321_v54  ;;  %v1662_v61 = vld [vmem:[#allocation2 + $0x54] sm:$0xf0]  ;;  %v1431_v62 = vld [vmem:[#allocation2 + $0x148] sm:$0xf] }
  0xfe   :  { %690 = vmatpush.bf16.msrb.mxu3 %v1512_v7  ;;  %659 = vmatmul.bf16.vlgmr.msrb.gmra.mxu0 %v1992_v13  ;;  %v1452_v63 = vor.u32 %v1696_v55, %v1449_v56  ;;  %v1694_v0 = vld [vmem:[#allocation2 + $0x154] sm:$0xf0]  ;;  %v1660_v1 = vld [vmem:[#allocation2 + $0x4c] sm:$0xf]  ;;  %v1305_v2 = vld [vmem:[#allocation2 + $0x58] sm:$0xf0]  ;;  %v1304_v5 = vor.u32 %v1662_v61, %v1303_v60 }
  0xff   :  { %703 = vmatpush.bf16.msra.mxu0 %v1388_v8  ;;  %672 = vmatmul.bf16.vlgmr.msrb.gmra.mxu1 %v1996_v17  ;;  %v1692_v3 = vld [vmem:[#allocation2 + $0x14c] sm:$0xf]  ;;  %v1433_v4 = vld [vmem:[#allocation2 + $0x158] sm:$0xf0]  ;;  %v1432_v6 = vor.u32 %v1694_v0, %v1431_v62  ;;  %v1308_v7 = vor.u32 %v1660_v1, %v1305_v2  ;;  %v1287_v8 = vld [vmem:[#allocation2 + $0x28] sm:$0xf] }
 0x100   :  { %716 = vmatpush.bf16.msra.mxu1 %v1516_v12  ;;  %v1658_v9 = vld [vmem:[#allocation2 + $0x34] sm:$0xf0]  ;;  %v1415_v10 = vld [vmem:[#allocation2 + $0x128] sm:$0xf]  ;;  %v1436_v11 = vor.u32 %v1692_v3, %v1433_v4  ;;  %v1656_v14 = vld [vmem:[#allocation2 + $0x2c] sm:$0xf] }
 0x101   :  { %678 = vmatpush.bf16.msrb.mxu2 %v1368_v20  ;;  %v1690_v12 = vld [vmem:[#allocation2 + $0x134] sm:$0xf0]  ;;  %v1289_v15 = vld [vmem:[#allocation2 + $0x38] sm:$0xf0]  ;;  %v1688_v16 = vld [vmem:[#allocation2 + $0x12c] sm:$0xf]  ;;  %v1288_v19 = vor.u32 %v1658_v9, %v1287_v8 }
 0x102   :  { %691 = vmatpush.bf16.msrb.mxu3 %v1496_v21  ;;  %v1417_v18 = vld [vmem:[#allocation2 + $0x138] sm:$0xf0]  ;;  %v1416_v20 = vor.u32 %v1690_v12, %v1415_v10  ;;  %v1292_v21 = vor.u32 %v1656_v14, %v1289_v15  ;;  %v1654_v24 = vld [vmem:[#allocation2 + $0x14] sm:$0xf0]  ;;  %v1399_v23 = vld [vmem:[#allocation2 + $0x108] sm:$0xf] }
 0x103   :  { %704 = vmatpush.bf16.msra.mxu0 %v1372_v22  ;;  %v1271_v22 = vld [vmem:[#allocation2 + $0x8] sm:$0xf]  ;;  %v1420_v26 = vor.u32 %v1688_v16, %v1417_v18  ;;  %v1652_v28 = vld [vmem:[#allocation2 + $0xc] sm:$0xf]  ;;  %v1273_v29 = vld [vmem:[#allocation2 + $0x18] sm:$0xf0] }
 0x104   :  { %717 = vmatpush.bf16.msra.mxu1 %v1500_v27  ;;  %v1686_v27 = vld [vmem:[#allocation2 + $0x114] sm:$0xf0]  ;;  %v1684_v25 = vld [vmem:[#allocation2 + $0x10c] sm:$0xf]  ;;  %v1401_v30 = vld [vmem:[#allocation2 + $0x118] sm:$0xf0]  ;;  %v1272_v31 = vor.u32 %v1654_v24, %v1271_v22 }
 0x105   :  { %679 = vmatpush.bf16.msrb.mxu2 %v1352_v32  ;;  %v1400_v32 = vor.u32 %v1686_v27, %v1399_v23  ;;  %vm847_vm8 = vcmask 1042434   ;;  %vm849_vm9 = vcmask 1041408  }
 0x106   :  { %692 = vmatpush.bf16.msrb.mxu3 %v1480_v34  ;;  %v1276_v34 = vor.u32 %v1652_v28, %v1273_v29 }
 0x107   :  { %705 = vmatpush.bf16.msra.mxu0 %v1356_v35  ;;  %v1404_v35 = vor.u32 %v1684_v25, %v1401_v30 }
 0x108   :  { %718 = vmatpush.bf16.msra.mxu1 %v1484_v39 }
 0x109   :  { %680 = vmatpush.bf16.msrb.mxu2 %v1336_v45 }
 0x10a   :  { %693 = vmatpush.bf16.msrb.mxu3 %v1464_v46 }
 0x10b   :  { %706 = vmatpush.bf16.msra.mxu0 %v1340_v47 }
 0x10c   :  { %719 = vmatpush.bf16.msra.mxu1 %v1468_v51 }
 0x10d   :  { %681 = vmatpush.bf16.msrb.mxu2 %v1320_v57 }
 0x10e   :  { %694 = vmatpush.bf16.msrb.mxu3 %v1448_v58 }
 0x10f   :  { %707 = vmatpush.bf16.msra.mxu0 %v1324_v59 }
 0x110   :  { %720 = vmatpush.bf16.msra.mxu1 %v1452_v63 }
 0x111   :  { %682 = vmatpush.bf16.msrb.mxu2 %v1304_v5 }
 0x112   :  { %695 = vmatpush.bf16.msrb.mxu3 %v1432_v6 }
 0x113   :  { %708 = vmatpush.bf16.msra.mxu0 %v1308_v7 }
 0x114   :  { %721 = vmatpush.bf16.msra.mxu1 %v1436_v11 }
 0x115   :  { %683 = vmatpush.bf16.msrb.mxu2 %v1288_v19 }
 0x116   :  { %696 = vmatpush.bf16.msrb.mxu3 %v1416_v20 }
 0x117   :  { %709 = vmatpush.bf16.msra.mxu0 %v1292_v21 }
 0x118   :  { %722 = vmatpush.bf16.msra.mxu1 %v1420_v26 }
 0x119   :  { %684 = vmatpush.bf16.msrb.mxu2 %v1272_v31 }
 0x11a   :  { %697 = vmatpush.bf16.msrb.mxu3 %v1400_v32 }
 0x11b   :  { %710 = vmatpush.bf16.msra.mxu0 %v1276_v34 }
 0x11c   :  { %723 = vmatpush.bf16.msra.mxu1 %v1404_v35  ;;  %685 = vmatmul.bf16.vlgmr.msrb.gmra.mxu2 %v1992_v13 }
 0x11d   :  { %698 = vmatmul.bf16.vlgmr.msrb.gmra.mxu3 %v1996_v17 }
 0x11e   :  { %711 = vmatmul.bf16.vlgmr.msra.gmra.mxu0 %v1992_v13 }
 0x11f   :  { %724 = vmatmul.bf16.vlgmr.msra.gmra.mxu1 %v1996_v17 }
 0x17b   :  { %v660_v36 = vpop.f32.mrf.mxu0 }
 0x17c   :  { %v673_v37 = vpop.f32.mrf.mxu1 }
 0x17d   :  { %v674_v38 = vadd.f32 %v673_v37, %v660_v36 }
 0x17f   :  { %v735_v39 = vrot.slane %v674_v38, 4  ;;  %v634_v40 = vpop.f32.mrf.mxu2 }
 0x180   :  { %v647_v42 = vpop.f32.mrf.mxu3 }
 0x181   :  { %v736_v41 = vadd.f32 %v735_v39, %v674_v38  ;;  %v648_v43 = vadd.f32 %v647_v42, %v634_v40 }
 0x183   :  { %v737_v44 = vrot.slane %v736_v41, 2  ;;  %v662_v45 = vpop.f32.mrf.mxu0  ;;  %v729_v46 = vrot.slane %v648_v43, 4 }
 0x184   :  { %v675_v47 = vpop.f32.mrf.mxu1 }
 0x185   :  { %v738_v48 = vadd.f32 %v737_v44, %v736_v41  ;;  %v730_v49 = vadd.f32 %v729_v46, %v648_v43 }
 0x187   :  { %v739_v50 = vrot.slane %v738_v48, 1  ;;  %v731_v51 = vrot.slane %v730_v49, 2  ;;  %v636_v52 = vpop.f32.mrf.mxu2 }
 0x188   :  { %v649_v53 = vpop.f32.mrf.mxu3 }
 0x189   :  { %v740_v13 = vadd.f32 %v739_v50, %v738_v48  ;;  %v732_v17 = vadd.f32 %v731_v51, %v730_v49 }
 0x18b   :  { %v754_v54 = vmul.f32 %v740_v13, %v1979_v33  ;;  %v733_v55 = vrot.slane %v732_v17, 1 }
 0x18d   :  { %v2007_v56 = vsub.f32 %v674_v38, %v754_v54  ;;  %v734_v57 = vadd.f32 %v733_v55, %v732_v17 }
 0x18f   :  { %v753_v58 = vmul.f32 %v734_v57, %v1979_v33  ;;  %v762_v59 = vmul.f32 %v2007_v56, %v2007_v56 }
 0x191   :  { %v2012_v60 = vsub.f32 %v648_v43, %v753_v58  ;;  %v771_v62 = vrot.slane %v762_v59, 4 }
 0x193   :  { %v761_v61 = vmul.f32 %v2012_v60, %v2012_v60  ;;  %v772_v1 = vadd.f32 %v771_v62, %v762_v59 }
 0x195   :  { %v765_v63 = vrot.slane %v761_v61, 4  ;;  %v773_v6 = vrot.slane %v772_v1, 2 }
 0x197   :  { %v766_v4 = vadd.f32 %v765_v63, %v761_v61  ;;  %v774_v15 = vadd.f32 %v773_v6, %v772_v1 }
 0x199   :  { %v767_v10 = vrot.slane %v766_v4, 2  ;;  %v775_v24 = vrot.slane %v774_v15, 1 }
 0x19b   :  { %v712_v0 = vpop.f32.mrf.mxu0  ;;  %v768_v20 = vadd.f32 %v767_v10, %v766_v4  ;;  %v776_v31 = vadd.f32 %v775_v24, %v774_v15 }
 0x19c   :  { %v725_v2 = vpop.f32.mrf.mxu1 }
 0x19d   :  { %v726_v3 = vadd.f32 %v725_v2, %v712_v0  ;;  %v769_v29 = vrot.slane %v768_v20, 1  ;;  %v790_v38 = vmul.f32 %v776_v31, %v1979_v33 }
 0x19f   :  { %v747_v5 = vrot.slane %v726_v3, 4  ;;  %v686_v7 = vpop.f32.mrf.mxu2  ;;  %v770_v35 = vadd.f32 %v769_v29, %v768_v20  ;;  %v796_v44 = vadd.f32 1e-05, %v790_v38 }
 0x1a0   :  { %v699_v9 = vpop.f32.mrf.mxu3 }
 0x1a1   :  { %v748_v8 = vadd.f32 %v747_v5, %v726_v3  ;;  %v700_v11 = vadd.f32 %v699_v9, %v686_v7  ;;  %v789_v41 = vmul.f32 %v770_v35, %v1979_v33  ;;  %1762 = vrsqrt.f32 %v796_v44  ;;  %v867_v35 = vld [vmem:[#allocation10 + $0x5] ss:$2 sm:$0xf] }
 0x1a2   :  { %vm815_vm13 = vweird.f32 %v796_v44  ;;  %v869_v38 = vperm.slane %v867_v35, 0 }
 0x1a3   :  { %v749_v12 = vrot.slane %v748_v8, 2  ;;  %v714_v14 = vpop.f32.mrf.mxu0  ;;  %v741_v16 = vrot.slane %v700_v11, 4  ;;  %v795_v47 = vadd.f32 1e-05, %v789_v41  ;;  %v872_v41 = vperm.slane %v867_v35, 3 }
 0x1a4   :  { %v727_v18 = vpop.f32.mrf.mxu1 }
 0x1a5   :  { %v750_v19 = vadd.f32 %v749_v12, %v748_v8  ;;  %v742_v21 = vadd.f32 %v741_v16, %v700_v11  ;;  %1764 = vrsqrt.f32 %v795_v47  ;;  %vm805_vm2 = vweird.f32 %v795_v47 }
 0x1a7   :  { %v751_v22 = vrot.slane %v750_v19, 1  ;;  %v743_v23 = vrot.slane %v742_v21, 2  ;;  %v688_v26 = vpop.f32.mrf.mxu2  ;;  %v1763_v54 = vpop.eup %1762 }
 0x1a8   :  { %v701_v28 = vpop.f32.mrf.mxu3  ;;  %v810_v61 = vmul.f32 %v1763_v54, %v796_v44  ;;  %vm816_vm11 = vweird.f32 %v1763_v54 }
 0x1a9   :  { %v752_v27 = vadd.f32 %v751_v22, %v750_v19  ;;  %v744_v25 = vadd.f32 %v743_v23, %v742_v21  ;;  %vm2030_vm15 = vmor %vm815_vm13, %vm816_vm11 }
 0x1aa   :  { %v811_v1 = vmul.f32 %v1763_v54, %v810_v61 }
 0x1ab   :  { %v756_v30 = vmul.f32 %v752_v27, %v1979_v33  ;;  %v745_v32 = vrot.slane %v744_v25, 1  ;;  %v1765_v58 = vpop.eup %1764 }
 0x1ac   :  { %v800_v63 = vmul.f32 %v1765_v58, %v795_v47  ;;  %v812_v5 = vmul.f32 0.5, %v811_v1  ;;  %vm806_vm14 = vweird.f32 %v1765_v58 }
 0x1ad   :  { %v2017_v34 = vsub.f32 %v726_v3, %v756_v30  ;;  %v746_v36 = vadd.f32 %v745_v32, %v744_v25  ;;  %vm807_vm4 = vmor %vm805_vm2, %vm806_vm14  ;;  %v794_v30 = vld [vmem:[#allocation10 + $0x4] ss:$2 sm:$0xf] }
 0x1ae   :  { %v801_v3 = vmul.f32 %v1765_v58, %v800_v63  ;;  %v813_v10 = vsub.f32 1.5, %v812_v5 }
 0x1af   :  { %v764_v37 = vmul.f32 %v2017_v34, %v2017_v34  ;;  %v755_v39 = vmul.f32 %v746_v36, %v1979_v33 }
 0x1b0   :  { %v802_v7 = vmul.f32 0.5, %v801_v3  ;;  %v814_v16 = vmul.f32 %v1763_v54, %v813_v10 }
 0x1b1   :  { %v783_v40 = vrot.slane %v764_v37, 4  ;;  %v2024_v42 = vsub.f32 %v700_v11, %v755_v39  ;;  %v870_v39 = vperm.slane %v867_v35, 1 }
 0x1b2   :  { %v803_v14 = vsub.f32 1.5, %v802_v7  ;;  %v818_v22 = vsel %vm2030_vm15, %v1763_v54, %v814_v16 }
 0x1b3   :  { %v784_v43 = vadd.f32 %v783_v40, %v764_v37  ;;  %v763_v45 = vmul.f32 %v2024_v42, %v2024_v42  ;;  %v843_v28 = vrot.slane %v818_v22, 7  ;;  %v871_v40 = vperm.slane %v867_v35, 2 }
 0x1b4   :  { %v804_v20 = vmul.f32 %v1765_v58, %v803_v14 }
 0x1b5   :  { %v785_v46 = vrot.slane %v784_v43, 2  ;;  %v777_v48 = vrot.slane %v763_v45, 4 }
 0x1b6   :  { %v808_v26 = vsel %vm807_vm4, %v1765_v58, %v804_v20 }
 0x1b7   :  { %v786_v49 = vadd.f32 %v785_v46, %v784_v43  ;;  %v778_v50 = vadd.f32 %v777_v48, %v763_v45  ;;  %v846_v31 = vsel %vm209_vm7, %v808_v26, %v843_v28 }
 0x1b9   :  { %v787_v51 = vrot.slane %v786_v49, 1  ;;  %v779_v52 = vrot.slane %v778_v50, 2 }
 0x1bb   :  { %v788_v13 = vadd.f32 %v787_v51, %v786_v49  ;;  %v780_v53 = vadd.f32 %v779_v52, %v778_v50 }
 0x1bd   :  { %v792_v17 = vmul.f32 %v788_v13, %v1979_v33  ;;  %v781_v55 = vrot.slane %v780_v53, 1 }
 0x1bf   :  { %v798_v57 = vadd.f32 1e-05, %v792_v17  ;;  %v782_v59 = vadd.f32 %v781_v55, %v780_v53 }
 0x1c1   :  { %1766 = vrsqrt.f32 %v798_v57  ;;  %v791_v62 = vmul.f32 %v782_v59, %v1979_v33  ;;  %vm835_vm0 = vweird.f32 %v798_v57 }
 0x1c3   :  { %v797_v0 = vadd.f32 1e-05, %v791_v62 }
 0x1c5   :  { %1768 = vrsqrt.f32 %v797_v0  ;;  %vm825_vm5 = vweird.f32 %v797_v0 }
 0x1c7   :  { %v1767_v2 = vpop.eup %1766 }
 0x1c8   :  { %v830_v4 = vmul.f32 %v1767_v2, %v798_v57  ;;  %vm836_vm12 = vweird.f32 %v1767_v2 }
 0x1c9   :  { %vm837_vm3 = vmor %vm835_vm0, %vm836_vm12 }
 0x1ca   :  { %v831_v6 = vmul.f32 %v1767_v2, %v830_v4 }
 0x1cb   :  { %v1769_v8 = vpop.eup %1768 }
 0x1cc   :  { %v832_v9 = vmul.f32 0.5, %v831_v6  ;;  %v820_v11 = vmul.f32 %v1769_v8, %v797_v0  ;;  %vm826_vm1 = vweird.f32 %v1769_v8 }
 0x1cd   :  { %vm827_vm6 = vmor %vm825_vm5, %vm826_vm1 }
 0x1ce   :  { %v833_v12 = vsub.f32 1.5, %v832_v9  ;;  %v821_v15 = vmul.f32 %v1769_v8, %v820_v11 }
 0x1d0   :  { %v834_v33 = vmul.f32 %v1767_v2, %v833_v12  ;;  %v822_v18 = vmul.f32 0.5, %v821_v15 }
 0x1d2   :  { %v823_v21 = vsub.f32 1.5, %v822_v18  ;;  %v838_v24 = vsel %vm837_vm3, %v1767_v2, %v834_v33 }
 0x1d3   :  { %v845_v29 = vrot.slane %v838_v24, 5 }
 0x1d4   :  { %v824_v23 = vmul.f32 %v1769_v8, %v823_v21 }
 0x1d6   :  { %v828_v27 = vsel %vm827_vm6, %v1769_v8, %v824_v23 }
 0x1d7   :  { %v844_v25 = vrot.slane %v828_v27, 6 }
 0x1d9   :  { %v848_v32 = vsel %vm847_vm8, %v844_v25, %v845_v29 }
 0x1da   :  { %v850_v36 = vsel %vm849_vm9, %v846_v31, %v848_v32 }
 0x1db   :  { %v852_v37 = vmul.f32 %v850_v36, %v794_v30 }
 0x1dd   :  { %v854_v43 = vperm.slane %v852_v37, 0  ;;  %v855_v44 = vperm.slane %v852_v37, 1  ;;  %v856_v45 = vperm.slane %v852_v37, 2  ;;  %v857_v46 = vperm.slane %v852_v37, 3 }
 0x1df   :  { %v862_v47 = vmul.f32 %v854_v43, %v2012_v60  ;;  %v863_v48 = vmul.f32 %v855_v44, %v2007_v56  ;;  %v864_v49 = vmul.f32 %v856_v45, %v2024_v42  ;;  %v865_v50 = vmul.f32 %v857_v46, %v2017_v34 }
 0x1e1   :  { %v877_v51 = vadd.f32 %v869_v38, %v862_v47  ;;  %v878_v52 = vadd.f32 %v870_v39, %v863_v48  ;;  %v879_v13 = vadd.f32 %v871_v40, %v864_v49  ;;  %v880_v53 = vadd.f32 %v872_v41, %v865_v50 }
 0x1e3   :  { %vm881_vm7 = vcmp.gt.f32.partialorder %v877_v51, 0.0  ;;  %vm882_vm10 = vcmp.gt.f32.partialorder %v878_v52, 0.0  ;;  %vm883_vm11 = vcmp.gt.f32.partialorder %v879_v13, 0.0  ;;  %vm884_vm12 = vcmp.gt.f32.partialorder %v880_v53, 0.0 }
 0x1e4   :  { %v885_v17 = vmul.f32 0.2, %v877_v51  ;;  %v886_v54 = vmul.f32 0.2, %v878_v52  ;;  %v887_v55 = vmul.f32 0.2, %v879_v13 }
 0x1e5   :  { %v888_v57 = vmul.f32 0.2, %v880_v53 }
 0x1e6   :  { %v2041_v58 = vsel %vm881_vm7, %v877_v51, %v885_v17  ;;  %v2043_v60 = vsel %vm882_vm10, %v878_v52, %v886_v54  ;;  %v2045_v56 = vsel %vm883_vm11, %v879_v13, %v887_v55 }
 0x1e7   :  { %v2047_v42 = vsel %vm884_vm12, %v880_v53, %v888_v57 }
 0x1e8   :  { %1921 = dma.done.wait [#allocation4 + $0x1], 4096 }
 0x1e9   :  { %1922 = vsyncadd [#allocation4 + $0x1], 4294963200  ;;  %v1722_v34 = vld [vmem:[#allocation3 + $0x38] sm:$0xff]  ;;  %v1721_v63 = vld [vmem:[#allocation3 + $0x30] sm:$0xff]  ;;  %v897_v29 = vpack.c.bf16 %v2041_v58, %v2041_v58  ;;  %v898_v25 = vpack.c.bf16 %v2043_v60, %v2043_v60  ;;  %v899_v30 = vpack.c.bf16 %v2045_v56, %v2045_v56  ;;  %v900_v31 = vpack.c.bf16 %v2047_v42, %v2047_v42  ;;  %s1933_s3 = smov [#allocation11]   ;;  %s1219_s19 = sshll.u32 %s2065_s5, 4  ;;  %s1220_s19 = int_to_ptr.hbm [resolvable:$true] %s1219_s19 }
 0x1ea   :  { %v1730_v59 = vld [vmem:[#allocation3 + $0x78] sm:$0xff]  ;;  %1159 = vmatpush.bf16.msra.mxu2 %v1722_v34  ;;  %v1729_v0 = vld [vmem:[#allocation3 + $0x70] sm:$0xff]  ;;  %v1720_v3 = vld [vmem:[#allocation3 + $0x28] sm:$0xff]  ;;  %s1217_s4 = sshll.u32 %s1933_s3, 4  ;;  %s1218_s4 = int_to_ptr.vmem [resolvable:$true] %s1217_s4 }
 0x1eb   :  { %v1738_v61 = vld [vmem:[#allocation3 + $0xb8] sm:$0xff]  ;;  %1172 = vmatpush.bf16.msra.mxu3 %v1730_v59  ;;  %v1737_v1 = vld [vmem:[#allocation3 + $0xb0] sm:$0xff]  ;;  %v1728_v4 = vld [vmem:[#allocation3 + $0x68] sm:$0xff] }
 0x1ec   :  { %v1746_v62 = vld [vmem:[#allocation3 + $0xf8] sm:$0xff]  ;;  %1185 = vmatpush.bf16.msrb.mxu0 %v1738_v61  ;;  %v1745_v2 = vld [vmem:[#allocation3 + $0xf0] sm:$0xff]  ;;  %v1736_v5 = vld [vmem:[#allocation3 + $0xa8] sm:$0xff] }
 0x1ed   :  { %1198 = vmatpush.bf16.msrb.mxu1 %v1746_v62  ;;  %v1744_v6 = vld [vmem:[#allocation3 + $0xe8] sm:$0xff]  ;;  %v1719_v7 = vld [vmem:[#allocation3 + $0x20] sm:$0xff]  ;;  %v1718_v11 = vld [vmem:[#allocation3 + $0x18] sm:$0xff] }
 0x1ee   :  { %1160 = vmatpush.bf16.msra.mxu2 %v1721_v63  ;;  %v1727_v8 = vld [vmem:[#allocation3 + $0x60] sm:$0xff]  ;;  %v1726_v12 = vld [vmem:[#allocation3 + $0x58] sm:$0xff]  ;;  %v1717_v16 = vld [vmem:[#allocation3 + $0x10] sm:$0xff] }
 0x1ef   :  { %1173 = vmatpush.bf16.msra.mxu3 %v1729_v0  ;;  %v1735_v9 = vld [vmem:[#allocation3 + $0xa0] sm:$0xff]  ;;  %v1734_v14 = vld [vmem:[#allocation3 + $0x98] sm:$0xff]  ;;  %v1725_v33 = vld [vmem:[#allocation3 + $0x50] sm:$0xff] }
 0x1f0   :  { %1186 = vmatpush.bf16.msrb.mxu0 %v1737_v1  ;;  %v1743_v10 = vld [vmem:[#allocation3 + $0xe0] sm:$0xff]  ;;  %v1742_v15 = vld [vmem:[#allocation3 + $0xd8] sm:$0xff]  ;;  %v1733_v18 = vld [vmem:[#allocation3 + $0x90] sm:$0xff] }
 0x1f1   :  { %1199 = vmatpush.bf16.msrb.mxu1 %v1745_v2  ;;  %v1741_v19 = vld [vmem:[#allocation3 + $0xd0] sm:$0xff]  ;;  %v1716_v20 = vld [vmem:[#allocation3 + $0x8] sm:$0xff]  ;;  %v1715_v23 = vld [vmem:[#allocation3] sm:$0xff] }
 0x1f2   :  { %1161 = vmatpush.bf16.msra.mxu2 %v1720_v3  ;;  %v1724_v21 = vld [vmem:[#allocation3 + $0x48] sm:$0xff]  ;;  %v1723_v26 = vld [vmem:[#allocation3 + $0x40] sm:$0xff]  ;;  %v1770_v36 = vld [vmem:[#allocation10 + $0xc] ss:$0 sm:$0xff] }
 0x1f3   :  { %1174 = vmatpush.bf16.msra.mxu3 %v1728_v4  ;;  %v1732_v22 = vld [vmem:[#allocation3 + $0x88] sm:$0xff]  ;;  %v1731_v27 = vld [vmem:[#allocation3 + $0x80] sm:$0xff] }
 0x1f4   :  { %1187 = vmatpush.bf16.msrb.mxu0 %v1736_v5  ;;  %v1740_v24 = vld [vmem:[#allocation3 + $0xc8] sm:$0xff]  ;;  %v1739_v28 = vld [vmem:[#allocation3 + $0xc0] sm:$0xff] }
 0x1f5   :  { %1200 = vmatpush.bf16.msrb.mxu1 %v1744_v6 }
 0x1f6   :  { %1162 = vmatpush.bf16.msra.mxu2 %v1719_v7 }
 0x1f7   :  { %1175 = vmatpush.bf16.msra.mxu3 %v1727_v8 }
 0x1f8   :  { %1188 = vmatpush.bf16.msrb.mxu0 %v1735_v9 }
 0x1f9   :  { %1201 = vmatpush.bf16.msrb.mxu1 %v1743_v10 }
 0x1fa   :  { %1163 = vmatpush.bf16.msra.mxu2 %v1718_v11 }
 0x1fb   :  { %1176 = vmatpush.bf16.msra.mxu3 %v1726_v12 }
 0x1fc   :  { %1189 = vmatpush.bf16.msrb.mxu0 %v1734_v14 }
 0x1fd   :  { %1202 = vmatpush.bf16.msrb.mxu1 %v1742_v15 }
 0x1fe   :  { %1164 = vmatpush.bf16.msra.mxu2 %v1717_v16 }
 0x1ff   :  { %1177 = vmatpush.bf16.msra.mxu3 %v1725_v33 }
 0x200   :  { %1190 = vmatpush.bf16.msrb.mxu0 %v1733_v18 }
 0x201   :  { %1203 = vmatpush.bf16.msrb.mxu1 %v1741_v19 }
 0x202   :  { %1165 = vmatpush.bf16.msra.mxu2 %v1716_v20 }
 0x203   :  { %1178 = vmatpush.bf16.msra.mxu3 %v1724_v21 }
 0x204   :  { %1191 = vmatpush.bf16.msrb.mxu0 %v1732_v22 }
 0x205   :  { %1204 = vmatpush.bf16.msrb.mxu1 %v1740_v24 }
 0x206   :  { %1166 = vmatpush.bf16.msra.mxu2 %v1715_v23 }
 0x207   :  { %1179 = vmatpush.bf16.msra.mxu3 %v1723_v26 }
 0x208   :  { %1192 = vmatpush.bf16.msrb.mxu0 %v1731_v27 }
 0x209   :  { %1205 = vmatpush.bf16.msrb.mxu1 %v1739_v28  ;;  %1167 = vmatmul.bf16.vlgmr.msra.gmra.mxu2 %v897_v29 }
 0x20a   :  { %1180 = vmatmul.bf16.vlgmr.msra.gmra.mxu3 %v898_v25 }
 0x20b   :  { %1193 = vmatmul.bf16.vlgmr.msrb.gmra.mxu0 %v899_v30 }
 0x20c   :  { %1206 = vmatmul.bf16.vlgmr.msrb.gmra.mxu1 %v900_v31 }
 0x288   :  { %v1194_v32 = vpop.f32.mrf.mxu0 }
 0x289   :  { %v1207_v35 = vpop.f32.mrf.mxu1 }
 0x28c   :  { %v1168_v37 = vpop.f32.mrf.mxu2 }
 0x28d   :  { %v1181_v38 = vpop.f32.mrf.mxu3  ;;  %v1169_v39 = vadd.f32 %v1770_v36, %v1168_v37 }
 0x28f   :  { %v1182_v40 = vadd.f32 %v1181_v38, %v1169_v39 }
 0x290   :  { %v1196_v41 = vpop.f32.mrf.mxu0 }
 0x291   :  { %v1209_v43 = vpop.f32.mrf.mxu1  ;;  %v1195_v44 = vadd.f32 %v1194_v32, %v1182_v40 }
 0x293   :  { %v1208_v45 = vadd.f32 %v1207_v35, %v1195_v44 }
 0x294   :  { %v1170_v46 = vpop.f32.mrf.mxu2 }
 0x295   :  { %v1183_v47 = vpop.f32.mrf.mxu3  ;;  %1211 = vst [vmem:[#allocation11] sm:$0xff] %v1208_v45 }
 0x296   :  { %1222 = dma.vmem_to_hbm [thread:$0]  %s1218_s4, 128, %s1220_s19, [#allocation7]  }
 0x297   :  { %1923 = dma.done.wait [#allocation7], 128  }
 0x298   :  { %1924 = vsyncadd [#allocation7], 4294967168 }
 0x299   :  { %1227 = vsyncpa [#allocation6], 1 }
 0x29a   :  { %1228 = vsyncpa [#allocation9], 1 }
 0x29b   :  { %1229 = vsyncpa [#allocation7], 1 }
 0x29c   :  { %1230 = vsyncmov [#allocation4] }
 0x29f   :  { %s1231_s20 = vpop.sfrf %1230 }
 0x2a0   :  { %p1645_p0 = scmp.ne.s32.totalorder %s1231_s20, 0 }
 0x2a2   :  { %1235 = shalt.err (%p1645_p0)  }
 0x2a3   :  { %1237 = vsyncmov [#allocation4 + $0x1] }
 0x2a6   :  { %s1238_s21 = vpop.sfrf %1237 }
 0x2a7   :  { %p1646_p1 = scmp.ne.s32.totalorder %s1238_s21, 0 }
 0x2a9   :  { %1242 = shalt.err (%p1646_p1)  }

</bundles_post_ra>
